<compile_context>
chip_gen: v7x
topology: tpu7x:2x2x1
jax: 0.10.0
libtpu: 0.0.40
codegen_flags: <defaults>
</compile_context>

<pallas_src>
import functools

import jax
import jax.numpy as jnp
from jax.experimental import pallas as pl
from jax.experimental.pallas import tpu as pltpu

LANES = 128
SUBLANES = 8


def _bce_kernel(t_ref, p_ref, o_ref, acc_ref, *, rows, block_rows, n_inner,
                needs_mask):
    o = pl.program_id(0)   # outer ("parallel") partition -> megacore on v7x
    k = pl.program_id(1)   # inner ("arbitrary") streaming/reduction axis

    @pl.when(k == 0)
    def _():
        acc_ref[...] = jnp.zeros_like(acc_ref)

    y = t_ref[...].astype(jnp.float32)
    x = p_ref[...].astype(jnp.float32)

    # PyTorch BCELoss: clamp each log term at -100.
    log_x = jnp.maximum(jnp.log(x), -100.0)
    log_1mx = jnp.maximum(jnp.log(1.0 - x), -100.0)
    # -(y*log_x + (1-y)*log_1mx) == -(log_1mx + y*(log_x - log_1mx))
    elem_loss = -(log_1mx + y * (log_x - log_1mx))

    if needs_mask:
        # Ragged tail and/or duplicated (clamped) blocks: zero out rows at or
        # past `rows`.  A single select AFTER the math is enough: select
        # discards NaN/Inf produced by garbage data in the padded region.
        row_ids = jax.lax.broadcasted_iota(jnp.int32, (block_rows, LANES), 0)
        base_row = (o * n_inner + k) * block_rows
        valid = (base_row + row_ids) < rows
        elem_loss = jnp.where(valid, elem_loss, 0.0)

    # Keep the per-step reduction vreg-shaped: (chunks, 8, 128) -> (8, 128)
    # is plain vreg adds on the VPU.
    acc_ref[...] += elem_loss.reshape(
        block_rows // SUBLANES, SUBLANES, LANES).sum(axis=0)

    @pl.when(k == pl.num_programs(1) - 1)
    def _():
        o_ref[0] = acc_ref[...]


def bce_loss(target, prediction, *, block_rows=8192, n_outer=2):
    """Mean BCE loss over all elements (matches torch.nn.BCELoss())."""
    assert target.shape == prediction.shape
    n = target.size

    t_flat = target.reshape(-1)
    p_flat = prediction.reshape(-1)
    if not jnp.issubdtype(t_flat.dtype, jnp.floating):
        t_flat = t_flat.astype(jnp.float32)
    if not jnp.issubdtype(p_flat.dtype, jnp.floating):
        p_flat = p_flat.astype(jnp.float32)

    # Zero-copy lane-dense (rows, 128) view when n % 128 == 0 (common case).
    # Only for odd sizes pad the <128-element remainder with (y=1, x=1), which
    # contributes exactly 0 loss.
    rem = (-n) % LANES
    if rem:
        # TODO(synk): for very large non-128-aligned inputs this pad still
        # materializes a copy; a flat 1-D in-kernel index mask would avoid it.
        t_flat = jnp.pad(t_flat, (0, rem), constant_values=1.0)
        p_flat = jnp.pad(p_flat, (0, rem), constant_values=1.0)

    rows = (n + rem) // LANES
    t2d = t_flat.reshape(rows, LANES)
    p2d = p_flat.reshape(rows, LANES)

    # Large streaming tile, clamped to the array; keep a multiple of 16
    # sublanes (valid tiling for both f32 and bf16 inputs).
    block_rows = max(16, (int(block_rows) // 16) * 16)
    rows_rounded = pl.cdiv(rows, 16) * 16
    block_rows = min(block_rows, rows_rounded)

    n_blocks = pl.cdiv(rows, block_rows)
    n_outer = max(1, min(int(n_outer), n_blocks))
    n_inner = pl.cdiv(n_blocks, n_outer)
    # Mask needed if the (n_outer * n_inner) block cover exceeds the real rows
    # (ragged last block and/or clamped duplicate blocks).
    needs_mask = (n_outer * n_inner * block_rows) != rows

    def in_map(o, k):
        # Clamp duplicate block indices to the last real block; their
        # contribution is zeroed by the in-kernel mask.
        return (jnp.minimum(o * n_inner + k, n_blocks - 1), 0)

    kernel = functools.partial(
        _bce_kernel, rows=rows, block_rows=block_rows, n_inner=n_inner,
        needs_mask=needs_mask)

    bytes_accessed = (n * (t2d.dtype.itemsize + p2d.dtype.itemsize)
                      + 4 * n_outer * SUBLANES * LANES)

    partials = pl.pallas_call(
        kernel,
        out_shape=jax.ShapeDtypeStruct((n_outer, SUBLANES, LANES), jnp.float32),
        grid_spec=pltpu.PrefetchScalarGridSpec(
            num_scalar_prefetch=0,
            grid=(n_outer, n_inner),
            in_specs=[
                pl.BlockSpec((block_rows, LANES), in_map),
                pl.BlockSpec((block_rows, LANES), in_map),
            ],
            out_specs=pl.BlockSpec((1, SUBLANES, LANES), lambda o, k: (o, 0, 0)),
            scratch_shapes=[pltpu.VMEM((SUBLANES, LANES), jnp.float32)],
        ),
        compiler_params=pltpu.CompilerParams(
            dimension_semantics=("parallel", "arbitrary"),
            vmem_limit_bytes=40 * 1024 * 1024,
        ),
        cost_estimate=pl.CostEstimate(
            flops=8 * n, transcendentals=2 * n,
            bytes_accessed=bytes_accessed),
    )(t2d, p2d)

    # Tiny final reduction of the per-partition partials outside the kernel.
    return jnp.sum(partials) * (1.0 / float(n))


if __name__ == "__main__":
    key = jax.random.PRNGKey(0)
    k1, k2 = jax.random.split(key)

    B, C, H, W = 2, 4, 16, 16
    # Both target and prediction must live in [0, 1] for BCELoss.
    target = jax.random.uniform(k1, (B, C, H, W), jnp.float32)
    prediction = jax.random.uniform(
        k2, (B, C, H, W), jnp.float32, minval=1e-4, maxval=1.0 - 1e-4)

    loss = bce_loss(target, prediction)
    jax.block_until_ready(loss)

    # Reference check in plain JAX (same clamped-log BCE, mean reduction).
    log_x = jnp.maximum(jnp.log(prediction), -100.0)
    log_1mx = jnp.maximum(jnp.log(1.0 - prediction), -100.0)
    ref = jnp.mean(-(target * log_x + (1.0 - target) * log_1mx))

    assert jnp.allclose(loss, ref, rtol=1e-5, atol=1e-5), (loss, ref)
    print("KERNEL_OK")
</pallas_src>

<mosaic_0001>
module attributes {stable_mosaic.version = 11 : i64} {
  func.func @_bce_kernel(%arg0: i32, %arg1: i32, %arg2: memref<16x128xf32, #tpu.memory_space<vmem>>, %arg3: memref<16x128xf32, #tpu.memory_space<vmem>>, %arg4: memref<1x8x128xf32, #tpu.memory_space<vmem>>, %arg5: memref<8x128xf32, #tpu.memory_space<vmem>>) attributes {dimension_semantics = [#tpu.dimension_semantics<parallel>, #tpu.dimension_semantics<arbitrary>], iteration_bounds = array<i64: 1, 1>, scalar_prefetch = 0 : i64, scratch_operands = 1 : i64, tpu.core_type = #tpu.core_type<tc>, window_params = [{transform_indices = @transform_0, window_bounds = array<i64: 16, 128>}, {transform_indices = @transform_1, window_bounds = array<i64: 16, 128>}, {transform_indices = @transform_2, window_bounds = array<i64: 1, 8, 128>}]} {
    %c0_i32 = arith.constant 0 : i32
    %0 = arith.cmpi eq, %arg1, %c0_i32 : i32
    %1 = arith.extui %0 : i1 to i32
    %c0_i32_0 = arith.constant 0 : i32
    %2 = arith.cmpi ne, %1, %c0_i32_0 : i32
    scf.if %2 {
      %cst_14 = arith.constant 0.000000e+00 : f32
      %26 = vector.broadcast %cst_14 : f32 to vector<8x128xf32>
      %c0_15 = arith.constant 0 : index
      %c0_16 = arith.constant 0 : index
      %27 = vector.load %arg5[%c0_15, %c0_16] : memref<8x128xf32, #tpu.memory_space<vmem>>, vector<8x128xf32>
      tpu.vector_store %arg5[%c0_15, %c0_16], %26 {strides = array<i32>} : memref<8x128xf32, #tpu.memory_space<vmem>>, vector<8x128xf32>,
    } else {
    }
    %c0 = arith.constant 0 : index
    %c0_1 = arith.constant 0 : index
    %3 = vector.load %arg2[%c0, %c0_1] : memref<16x128xf32, #tpu.memory_space<vmem>>, vector<16x128xf32>
    %c0_2 = arith.constant 0 : index
    %c0_3 = arith.constant 0 : index
    %4 = vector.load %arg3[%c0_2, %c0_3] : memref<16x128xf32, #tpu.memory_space<vmem>>, vector<16x128xf32>
    %5 = math.log %4 : vector<16x128xf32>
    %cst = arith.constant -1.000000e+02 : f32
    %6 = vector.broadcast %cst : f32 to vector<16x128xf32>
    %7 = arith.maximumf %5, %6 : vector<16x128xf32>
    %cst_4 = arith.constant 1.000000e+00 : f32
    %8 = vector.broadcast %cst_4 : f32 to vector<16x128xf32>
    %9 = arith.subf %8, %4 : vector<16x128xf32>
    %10 = math.log %9 : vector<16x128xf32>
    %cst_5 = arith.constant -1.000000e+02 : f32
    %11 = vector.broadcast %cst_5 : f32 to vector<16x128xf32>
    %12 = arith.maximumf %10, %11 : vector<16x128xf32>
    %13 = arith.subf %7, %12 : vector<16x128xf32>
    %14 = arith.mulf %3, %13 : vector<16x128xf32>
    %15 = arith.addf %12, %14 : vector<16x128xf32>
    %cst_6 = arith.constant 0.000000e+00 : f32
    %16 = vector.broadcast %cst_6 : f32 to vector<16x128xf32>
    %17 = arith.subf %16, %15 : vector<16x128xf32>
    %c0_7 = arith.constant 0 : index
    %c0_8 = arith.constant 0 : index
    %18 = vector.load %arg5[%c0_7, %c0_8] : memref<8x128xf32, #tpu.memory_space<vmem>>, vector<8x128xf32>
    %19 = vector.shape_cast %17 : vector<16x128xf32> to vector<2x8x128xf32>
    %cst_9 = arith.constant dense<0.000000e+00> : vector<8x128xf32>
    %20 = vector.multi_reduction <add>, %19, %cst_9 [0] : vector<2x8x128xf32> to vector<8x128xf32>
    %21 = arith.addf %18, %20 : vector<8x128xf32>
    %c0_10 = arith.constant 0 : index
    %c0_11 = arith.constant 0 : index
    %22 = vector.load %arg5[%c0_10, %c0_11] : memref<8x128xf32, #tpu.memory_space<vmem>>, vector<8x128xf32>
    tpu.vector_store %arg5[%c0_10, %c0_11], %21 {strides = array<i32>} : memref<8x128xf32, #tpu.memory_space<vmem>>, vector<8x128xf32>,
    %c0_i32_12 = arith.constant 0 : i32
    %23 = arith.cmpi eq, %arg1, %c0_i32_12 : i32
    %24 = arith.extui %23 : i1 to i32
    %c0_i32_13 = arith.constant 0 : i32
    %25 = arith.cmpi ne, %24, %c0_i32_13 : i32
    scf.if %25 {
      %c0_14 = arith.constant 0 : index
      %c0_15 = arith.constant 0 : index
      %26 = vector.load %arg5[%c0_14, %c0_15] : memref<8x128xf32, #tpu.memory_space<vmem>>, vector<8x128xf32>
      %c0_16 = arith.constant 0 : index
      %c0_17 = arith.constant 0 : index
      %c0_18 = arith.constant 0 : index
      %27 = vector.load %arg4[%c0_16, %c0_17, %c0_18] : memref<1x8x128xf32, #tpu.memory_space<vmem>>, vector<1x8x128xf32>
      %28 = vector.shape_cast %27 : vector<1x8x128xf32> to vector<8x128xf32>
      %29 = vector.shape_cast %26 : vector<8x128xf32> to vector<1x8x128xf32>
      tpu.vector_store %arg4[%c0_16, %c0_17, %c0_18], %29 {strides = array<i32>} : memref<1x8x128xf32, #tpu.memory_space<vmem>>, vector<1x8x128xf32>,
    } else {
    }
    return
  }
  func.func @transform_0(%arg0: i32, %arg1: i32) -> (i32, i32) {
    %c1_i32 = arith.constant 1 : i32
    %0 = arith.muli %arg0, %c1_i32 : i32
    %1 = arith.addi %0, %arg1 : i32
    %c0_i32 = arith.constant 0 : i32
    %2 = arith.minsi %1, %c0_i32 : i32
    %c0_i32_0 = arith.constant 0 : i32
    %c0_i32_1 = arith.constant 0 : i32
    return %2, %c0_i32_0 : i32, i32
  }
  func.func @transform_1(%arg0: i32, %arg1: i32) -> (i32, i32) {
    %c1_i32 = arith.constant 1 : i32
    %0 = arith.muli %arg0, %c1_i32 : i32
    %1 = arith.addi %0, %arg1 : i32
    %c0_i32 = arith.constant 0 : i32
    %2 = arith.minsi %1, %c0_i32 : i32
    %c0_i32_0 = arith.constant 0 : i32
    %c0_i32_1 = arith.constant 0 : i32
    return %2, %c0_i32_0 : i32, i32
  }
  func.func @transform_2(%arg0: i32, %arg1: i32) -> (i32, i32, i32) {
    %c0_i32 = arith.constant 0 : i32
    %c0_i32_0 = arith.constant 0 : i32
    %c0_i32_1 = arith.constant 0 : i32
    return %arg0, %c0_i32, %c0_i32_0 : i32, i32, i32
  }
}

</mosaic_0001>

<bundles_post_ra>
// kernel: tpu_custom_call.1
= control target key start
LH: loop header
LB: loop body
LE: loop exit
PB: predicated region body
PF: predicated region fallthrough
CT: control target
= control target key end

     0   :  { %7 = vsyncpa [#allocation4], 0  ;;  %s261_s0 = inlined_call_operand.hbm [shape: f32[16,128], index: 0, kind: input, shape index: {}]   ;;  %s262_s1 = inlined_call_operand.hbm [shape: f32[16,128], index: 1, kind: input, shape index: {}]   ;;  %s263_s2 = inlined_call_operand.hbm [shape: f32[1,8,128], index: 2, kind: output, shape index: {}]  }
   0x1   :  { %8 = vsyncpa [#allocation7], 0 }
   0x2   :  { %9 = vsyncpa [#allocation5], 0  ;;  %s205_s9 = smov [#allocation3]   ;;  %s133_s13 = scalar_lea.hbm %s261_s0, 256 }
   0x3   :  { %s21_s10 = sshll.u32 %s205_s9, 4  ;;  %p134_p0 = scmp.ne.s32.totalorder %s261_s0, %s133_s13  ;;  %s22_s10 = int_to_ptr.vmem [resolvable:$true] %s21_s10 }
   0x4   :  { %p137_p1 = scmp.lt.u32.totalorder %s133_s13, %s261_s0 }
   0x6   :  { %p139_p2 = pnand %p137_p1, %p134_p0 }
   0x8   :  { %142 = shalt.err (!%p139_p2)
}
   0x9   :  { %s143_s18 = scalar_lea.vmem %s22_s10, 256  ;;  %p148_p4 = scmp.lt.s32.totalorder %s22_s10, %s22_s10 }
   0xa   :  { %p144_p3 = scmp.ne.s32.totalorder %s22_s10, %s143_s18  ;;  %p149_p5 = scmp.lt.s32.totalorder %s143_s18, %s143_s18 }
   0xc   :  { %p150_p6 = por %p149_p5, %p148_p4 }
   0xe   :  { %p151_p7 = pnand %p150_p6, %p144_p3 }
  0x10   :  { %154 = shalt.err (!%p151_p7)
}
  0x11   :  { %s206_s19 = smov 128   ;;  %s207_s20 = smov 8  }
  0x12   :  { %27 = dma.hbm_to_vmem [thread:$0]  %s261_s0, 256, %s22_s10, [#allocation4], %s206_s19, %s206_s19, %s207_s20  }
  0x13   :  { %s208_s23 = smov [#allocation6]   ;;  %s155_s27 = scalar_lea.hbm %s262_s1, 256 }
  0x14   :  { %s39_s24 = sshll.u32 %s208_s23, 4  ;;  %p156_p8 = scmp.ne.s32.totalorder %s262_s1, %s155_s27  ;;  %s40_s24 = int_to_ptr.vmem [resolvable:$true] %s39_s24 }
  0x15   :  { %p159_p9 = scmp.lt.u32.totalorder %s155_s27, %s262_s1 }
  0x17   :  { %p161_p10 = pnand %p159_p9, %p156_p8 }
  0x19   :  { %164 = shalt.err (!%p161_p10)
}
  0x1a   :  { %s165_s4 = scalar_lea.vmem %s40_s24, 256  ;;  %p170_p12 = scmp.lt.s32.totalorder %s40_s24, %s40_s24 }
  0x1b   :  { %p166_p11 = scmp.ne.s32.totalorder %s40_s24, %s165_s4  ;;  %p171_p13 = scmp.lt.s32.totalorder %s165_s4, %s165_s4 }
  0x1d   :  { %p172_p0 = por %p171_p13, %p170_p12 }
  0x1f   :  { %p173_p1 = pnand %p172_p0, %p166_p11 }
  0x21   :  { %176 = shalt.err (!%p173_p1)
}
  0x22   :  { %45 = dma.hbm_to_vmem [thread:$0]  %s262_s1, 256, %s40_s24, [#allocation7], %s206_s19, %s206_s19, %s207_s20  }
  0x23   :  { %199 = dma.done.wait [#allocation4], 256  }
  0x24   :  { %200 = vsyncadd [#allocation4], 4294967040 }
  0x25   :  { %201 = dma.done.wait [#allocation7], 256  }
  0x26   :  { %202 = vsyncadd [#allocation7], 4294967040  ;;  %v67_v0 = vld [vmem:[#allocation6] sm:$0xff]  ;;  %v68_v1 = vld [vmem:[#allocation6 + $0x8] sm:$0xff]  ;;  %s209_s1 = smov [#allocation8]  }
  0x27   :  { %125 = vlog2.f32 %v67_v0  ;;  %v75_v2 = vsub.f32 1.0, %v67_v0  ;;  %v76_v3 = vsub.f32 1.0, %v68_v1  ;;  %v65_v15 = vld [vmem:[#allocation3] sm:$0xff]  ;;  %v66_v17 = vld [vmem:[#allocation3 + $0x8] sm:$0xff]  ;;  %s106_s6 = sshll.u32 %s209_s1, 4  ;;  %s107_s6 = int_to_ptr.vmem [resolvable:$true] %s106_s6 }
  0x28   :  { %127 = vlog2.f32 %v68_v1  ;;  %s177_s7 = scalar_lea.vmem %s107_s6, 128  ;;  %p182_p3 = scmp.lt.s32.totalorder %s107_s6, %s107_s6 }
  0x29   :  { %129 = vlog2.f32 %v75_v2  ;;  %p178_p2 = scmp.ne.s32.totalorder %s107_s6, %s177_s7  ;;  %p183_p4 = scmp.lt.s32.totalorder %s177_s7, %s177_s7 }
  0x2a   :  { %131 = vlog2.f32 %v76_v3 }
  0x2b   :  { %p184_p5 = por %p183_p4, %p182_p3 }
  0x2d   :  { %p185_p6 = pnand %p184_p5, %p178_p2 }
  0x31   :  { %v126_v4 = vpop.eup %125 }
  0x32   :  { %v128_v5 = vpop.eup %127  ;;  %v70_v6 = vmul.f32 0.6931472, %v126_v4 }
  0x33   :  { %v130_v7 = vpop.eup %129  ;;  %v72_v8 = vmul.f32 0.6931472, %v128_v5 }
  0x34   :  { %v132_v9 = vpop.eup %131  ;;  %v73_v10 = vmax.f32 %v70_v6, -100.0  ;;  %v78_v11 = vmul.f32 0.6931472, %v130_v7 }
  0x35   :  { %v74_v12 = vmax.f32 %v72_v8, -100.0  ;;  %v80_v13 = vmul.f32 0.6931472, %v132_v9 }
  0x36   :  { %v81_v14 = vmax.f32 %v78_v11, -100.0 }
  0x37   :  { %v82_v16 = vmax.f32 %v80_v13, -100.0 }
  0x38   :  { %v83_v18 = vsub.f32 %v73_v10, %v81_v14 }
  0x39   :  { %v84_v19 = vsub.f32 %v74_v12, %v82_v16 }
  0x3a   :  { %v85_v20 = vmul.f32 %v83_v18, %v65_v15 }
  0x3b   :  { %v86_v21 = vmul.f32 %v84_v19, %v66_v17 }
  0x3c   :  { %v87_v22 = vadd.f32 %v85_v20, %v81_v14 }
  0x3d   :  { %v88_v23 = vadd.f32 %v86_v21, %v82_v16 }
  0x3e   :  { %v89_v24 = vsub.f32 0.0, %v87_v22 }
  0x3f   :  { %v90_v25 = vsub.f32 0.0, %v88_v23 }
  0x41   :  { %v92_v26 = vadd.f32 %v90_v25, %v89_v24 }
  0x43   :  { %99 = vst [vmem:[#allocation8] sm:$0xff] %v92_v26 }
  0x44   :  { %188 = shalt.err (!%p185_p6)
}
  0x45   :  { %s189_s10 = scalar_lea.hbm %s263_s2, 128 }
  0x46   :  { %p190_p7 = scmp.ne.s32.totalorder %s263_s2, %s189_s10  ;;  %p193_p8 = scmp.lt.u32.totalorder %s189_s10, %s263_s2 }
  0x48   :  { %p195_p9 = pnand %p193_p8, %p190_p7 }
  0x4a   :  { %198 = shalt.err (!%p195_p9)
}
  0x4b   :  { %109 = dma.vmem_to_hbm [thread:$0]  %s107_s6, 128, %s263_s2, [#allocation5]  }
  0x4c   :  { %203 = dma.done.wait [#allocation5], 128  }
  0x4d   :  { %204 = vsyncadd [#allocation5], 4294967168 }
  0x4e   :  { %113 = vsyncpa [#allocation4], 1 }
  0x4f   :  { %114 = vsyncpa [#allocation7], 1 }
  0x50   :  { %115 = vsyncpa [#allocation5], 1 }

</bundles_post_ra>
